<compile_context>
chip_gen: v7x
topology: tpu7x:2x2x1
jax: 0.10.0
libtpu: 0.0.40
codegen_flags: <defaults>
</compile_context>

<pallas_src>
from functools import partial

import jax
import jax.numpy as jnp
from jax.experimental import pallas as pl
from jax.experimental.pallas import tpu as pltpu


# ----------------------------- plain-JAX glue ------------------------------
def point_form(priors):
    return jnp.concatenate(
        [priors[:, :2] - priors[:, 2:] / 2.0, priors[:, :2] + priors[:, 2:] / 2.0],
        axis=1,
    )


def jaccard(box_a, box_b):
    # both point-form; returns (A, B) IoU matrix
    max_xy = jnp.minimum(box_a[:, None, 2:], box_b[None, :, 2:])
    min_xy = jnp.maximum(box_a[:, None, :2], box_b[None, :, :2])
    wh = jnp.clip(max_xy - min_xy, 0.0)
    inter = wh[..., 0] * wh[..., 1]
    area_a = ((box_a[:, 2] - box_a[:, 0]) * (box_a[:, 3] - box_a[:, 1]))[:, None]
    area_b = ((box_b[:, 2] - box_b[:, 0]) * (box_b[:, 3] - box_b[:, 1]))[None, :]
    return inter / (area_a + area_b - inter)


def encode(matched, priors, variances):
    g_cxcy = (matched[:, :2] + matched[:, 2:]) / 2.0 - priors[:, :2]
    g_cxcy = g_cxcy / (variances[0] * priors[:, 2:])
    g_wh = (matched[:, 2:] - matched[:, :2]) / priors[:, 2:]
    g_wh = jnp.log(g_wh) / variances[1]
    return jnp.concatenate([g_cxcy, g_wh], axis=1)


def match_single(threshold, truths, labels, priors, variances):
    # TODO(synk): data-dependent matching (argmax + scatter) kept in plain JAX glue.
    overlaps = jaccard(truths, point_form(priors))           # (num_obj, P)
    best_prior_idx = jnp.argmax(overlaps, axis=1)             # (num_obj,)
    best_truth_overlap = jnp.max(overlaps, axis=0)            # (P,)
    best_truth_idx = jnp.argmax(overlaps, axis=0)             # (P,)
    best_truth_overlap = best_truth_overlap.at[best_prior_idx].set(2.0)
    best_truth_idx = best_truth_idx.at[best_prior_idx].set(
        jnp.arange(truths.shape[0], dtype=best_truth_idx.dtype)
    )
    matches = truths[best_truth_idx]                          # (P, 4)
    conf = labels[best_truth_idx].astype(jnp.int32) + 1
    conf = jnp.where(best_truth_overlap < threshold, 0, conf)
    loc = encode(matches, priors, variances)
    return loc, conf


# ------------------------------ Pallas kernel ------------------------------
def _multibox_loss_kernel(negpos_ratio, num_valid,
                          loc_p_ref, loc_t_ref, conf_ref, conf_t_ref,
                          out_ref, cej_ref):
    # One batch element per grid step; priors on lanes.
    loc_p = loc_p_ref[0]            # (4, P) f32
    loc_t = loc_t_ref[0]            # (4, P) f32
    conf = conf_ref[0]              # (C, P) f32
    conf_t = conf_t_ref[0]          # (1, P) i32

    C, P = conf.shape               # static; P is padded to a multiple of 128

    lane = jax.lax.broadcasted_iota(jnp.int32, (1, P), 1)     # prior index i
    valid = lane < num_valid                                   # mask lane padding
    pos = jnp.logical_and(conf_t > 0, valid)                   # (1, P)

    # --- localization smooth-L1 over positive priors (reduce over sublanes) ---
    d = jnp.abs(loc_p - loc_t)
    sl1 = jnp.sum(jnp.where(d < 1.0, 0.5 * d * d, d - 0.5), axis=0, keepdims=True)
    loss_l_b = jnp.sum(jnp.where(pos, sl1, 0.0))               # scalar

    # --- per-prior cross-entropy: log-sum-exp(logits) - logit[target] ---
    m = jnp.max(conf, axis=0, keepdims=True)                   # (1, P)
    lse = jnp.log(jnp.sum(jnp.exp(conf - m), axis=0, keepdims=True)) + m
    cls_iota = jax.lax.broadcasted_iota(jnp.int32, (C, P), 0)  # hoisted, used once
    gathered = jnp.sum(jnp.where(cls_iota == conf_t, conf, 0.0),
                       axis=0, keepdims=True)
    ce = lse - gathered                                        # (1, P), >= 0

    # --- hard negative mining: rank = #{j : ce_j > ce_i or (==, j < i)} ---
    # positives are kept in the ranking pool with 0 loss (as in PyTorch);
    # padded lanes get a -1e30 sentinel so they can never be selected.
    ce_mine = jnp.where(pos, 0.0, ce)
    ce_mine = jnp.where(valid, ce_mine, -1e30)

    # sublane-broadcast copy so 128-wide j-chunks can be transposed to sublanes
    cej_ref[...] = jnp.broadcast_to(ce_mine, (8, P))

    CJ = 128
    num_chunks = P // CJ

    def rank_body(c, rank):
        j0 = pl.multiple_of(c * CJ, CJ)
        chunk = cej_ref[:, pl.ds(j0, CJ)]                      # (8, CJ)
        ce_j = jnp.transpose(chunk)[:, 0:1]                    # (CJ, 1)
        j_idx = jax.lax.broadcasted_iota(jnp.int32, (CJ, 1), 0) + j0
        before = jnp.logical_or(
            ce_j > ce_mine,
            jnp.logical_and(ce_j == ce_mine, j_idx < lane))    # (CJ, P)
        return rank + jnp.sum(before.astype(jnp.float32), axis=0, keepdims=True)

    rank = jax.lax.fori_loop(0, num_chunks, rank_body,
                             jnp.zeros((1, P), jnp.float32))

    num_pos = jnp.sum(pos.astype(jnp.float32))                 # scalar
    num_neg = jnp.minimum(negpos_ratio * num_pos, float(num_valid - 1))
    neg = jnp.logical_and(rank < num_neg, valid)
    sel = jnp.logical_or(pos, neg)          # union, NOT sum of two masked sums
    loss_c_b = jnp.sum(jnp.where(sel, ce, 0.0))                # scalar

    # --- lane-dense per-batch partial output: rows 0/1/2 = loss_l/loss_c/N ---
    row = jax.lax.broadcasted_iota(jnp.int32, (8, 128), 0)
    out_ref[0] = jnp.where(row == 0, loss_l_b,
                 jnp.where(row == 1, loss_c_b,
                 jnp.where(row == 2, num_pos, 0.0)))


# -------------------------------- wrapper ----------------------------------
def multibox_loss(preds, targets, num_classes, threshold=0.5, negpos_ratio=3,
                  variance=(0.1, 0.2)):
    loc_data, conf_data, priors = preds
    B, P, _ = loc_data.shape
    C = conf_data.shape[-1]
    priors = priors[:P, :]

    truths = targets[:, :, :-1]
    labels = targets[:, :, -1]
    loc_t, conf_t = jax.vmap(
        lambda t, l: match_single(threshold, t, l, priors, variance)
    )(truths, labels)

    # Lane-dense layout: priors -> lanes (transpose done by XLA in the wrapper).
    # Kernel math stays in f32 (v5e has no bf16 VPU/EUP).
    loc_p_t = jnp.transpose(loc_data.astype(jnp.float32), (0, 2, 1))    # (B,4,P)
    loc_t_t = jnp.transpose(loc_t.astype(jnp.float32), (0, 2, 1))       # (B,4,P)
    conf_p_t = jnp.transpose(conf_data.astype(jnp.float32), (0, 2, 1))  # (B,C,P)
    conf_t_t = conf_t.astype(jnp.int32)[:, None, :]                     # (B,1,P)

    # Pad priors to a multiple of 128 lanes; padded lanes are masked in-kernel.
    P_pad = ((P + 127) // 128) * 128
    if P_pad != P:
        pad = P_pad - P
        loc_p_t = jnp.pad(loc_p_t, ((0, 0), (0, 0), (0, pad)))
        loc_t_t = jnp.pad(loc_t_t, ((0, 0), (0, 0), (0, pad)))
        conf_p_t = jnp.pad(conf_p_t, ((0, 0), (0, 0), (0, pad)))
        conf_t_t = jnp.pad(conf_t_t, ((0, 0), (0, 0), (0, pad)))

    kernel = partial(_multibox_loss_kernel, float(negpos_ratio), P)

    in_bytes = 4 * (loc_p_t.size + loc_t_t.size + conf_p_t.size + conf_t_t.size)
    cost = pl.CostEstimate(
        flops=int(B * (12 * P_pad + 6 * C * P_pad + 4 * P_pad * P_pad)),
        transcendentals=int(B * P_pad * (C + 1)),
        bytes_accessed=int(in_bytes + B * 8 * 128 * 4),
    )

    partials = pl.pallas_call(
        kernel,
        out_shape=jax.ShapeDtypeStruct((B, 8, 128), jnp.float32),
        grid_spec=pltpu.PrefetchScalarGridSpec(
            num_scalar_prefetch=0,
            grid=(B,),
            in_specs=[
                pl.BlockSpec((1, 4, P_pad), lambda b: (b, 0, 0)),
                pl.BlockSpec((1, 4, P_pad), lambda b: (b, 0, 0)),
                pl.BlockSpec((1, C, P_pad), lambda b: (b, 0, 0)),
                pl.BlockSpec((1, 1, P_pad), lambda b: (b, 0, 0)),
            ],
            out_specs=pl.BlockSpec((1, 8, 128), lambda b: (b, 0, 0)),
            scratch_shapes=[pltpu.VMEM((8, P_pad), jnp.float32)],
        ),
        compiler_params=pltpu.CompilerParams(
            dimension_semantics=("parallel",),      # per-image blocks -> megacore-safe
            vmem_limit_bytes=32 * 1024 * 1024,       # raise v5e's 16 MiB default
        ),
        cost_estimate=cost,
    )(loc_p_t, loc_t_t, conf_p_t, conf_t_t)

    sums = jnp.sum(partials[:, :3, 0], axis=0)       # [loss_l_sum, loss_c_sum, N]
    # PyTorch divides by N unguarded (NaN when N==0); guard per review.
    n = jnp.maximum(sums[2], 1.0)
    return sums[0] / n, sums[1] / n


# --------------------------------- main -------------------------------------
if __name__ == "__main__":
    bs = 2
    num_obj = 3
    num_classes = 8
    num_priors = 128  # 8x8 grid x 2 scales

    key = jax.random.PRNGKey(0)
    k_box_c, k_box_wh, k_lab, k_loc, k_conf = jax.random.split(key, 5)

    # priors: center-form grid
    g = (jnp.arange(8, dtype=jnp.float32) + 0.5) / 8.0
    cy, cx = jnp.meshgrid(g, g, indexing="ij")
    centers = jnp.stack([cx.reshape(-1), cy.reshape(-1)], axis=1)        # (64, 2)
    p_small = jnp.concatenate([centers, jnp.full((64, 2), 0.20)], axis=1)
    p_large = jnp.concatenate([centers, jnp.full((64, 2), 0.35)], axis=1)
    priors = jnp.concatenate([p_small, p_large], axis=0)                 # (128, 4)

    # synthetic ground-truth targets (point-form boxes + 0-based label)
    c = jax.random.uniform(k_box_c, (bs, num_obj, 2), minval=0.25, maxval=0.75)
    wh = jax.random.uniform(k_box_wh, (bs, num_obj, 2), minval=0.15, maxval=0.40)
    boxes = jnp.concatenate([c - wh / 2.0, c + wh / 2.0], axis=-1)
    labels = jax.random.randint(k_lab, (bs, num_obj, 1), 0, num_classes - 1)
    targets = jnp.concatenate([boxes, labels.astype(jnp.float32)], axis=-1)

    # synthetic network predictions
    loc_data = 0.1 * jax.random.normal(k_loc, (bs, num_priors, 4), dtype=jnp.float32)
    conf_data = jax.random.normal(k_conf, (bs, num_priors, num_classes), dtype=jnp.float32)

    loss_l, loss_c = multibox_loss((loc_data, conf_data, priors), targets, num_classes)
    jax.block_until_ready((loss_l, loss_c))
    print("KERNEL_OK")
</pallas_src>

<mosaic_0001>
module attributes {stable_mosaic.version = 11 : i64} {
  func.func @_multibox_loss_kernel(%arg0: i32, %arg1: memref<1x4x128xf32, #tpu.memory_space<vmem>>, %arg2: memref<1x4x128xf32, #tpu.memory_space<vmem>>, %arg3: memref<1x8x128xf32, #tpu.memory_space<vmem>>, %arg4: memref<1x1x128xi32, #tpu.memory_space<vmem>>, %arg5: memref<1x8x128xf32, #tpu.memory_space<vmem>>, %arg6: memref<8x128xf32, #tpu.memory_space<vmem>>) attributes {dimension_semantics = [#tpu.dimension_semantics<parallel>], iteration_bounds = array<i64: 2>, scalar_prefetch = 0 : i64, scratch_operands = 1 : i64, tpu.core_type = #tpu.core_type<tc>, window_params = [{transform_indices = @transform_0, window_bounds = array<i64: 1, 4, 128>}, {transform_indices = @transform_1, window_bounds = array<i64: 1, 4, 128>}, {transform_indices = @transform_2, window_bounds = array<i64: 1, 8, 128>}, {transform_indices = @transform_3, window_bounds = array<i64: 1, 1, 128>}, {transform_indices = @transform_4, window_bounds = array<i64: 1, 8, 128>}]} {
    %c0 = arith.constant 0 : index
    %c0_0 = arith.constant 0 : index
    %c0_1 = arith.constant 0 : index
    %0 = vector.load %arg1[%c0, %c0_0, %c0_1] : memref<1x4x128xf32, #tpu.memory_space<vmem>>, vector<1x4x128xf32>
    %1 = vector.shape_cast %0 : vector<1x4x128xf32> to vector<4x128xf32>
    %c0_2 = arith.constant 0 : index
    %c0_3 = arith.constant 0 : index
    %c0_4 = arith.constant 0 : index
    %2 = vector.load %arg2[%c0_2, %c0_3, %c0_4] : memref<1x4x128xf32, #tpu.memory_space<vmem>>, vector<1x4x128xf32>
    %3 = vector.shape_cast %2 : vector<1x4x128xf32> to vector<4x128xf32>
    %c0_5 = arith.constant 0 : index
    %c0_6 = arith.constant 0 : index
    %c0_7 = arith.constant 0 : index
    %4 = vector.load %arg3[%c0_5, %c0_6, %c0_7] : memref<1x8x128xf32, #tpu.memory_space<vmem>>, vector<1x8x128xf32>
    %5 = vector.shape_cast %4 : vector<1x8x128xf32> to vector<8x128xf32>
    %c0_8 = arith.constant 0 : index
    %c0_9 = arith.constant 0 : index
    %c0_10 = arith.constant 0 : index
    %6 = vector.load %arg4[%c0_8, %c0_9, %c0_10] : memref<1x1x128xi32, #tpu.memory_space<vmem>>, vector<1x1x128xi32>
    %7 = vector.shape_cast %6 : vector<1x1x128xi32> to vector<1x128xi32>
    %8 = tpu.iota {dimensions = array<i32: 1>} : vector<1x128xi32>
    %c128_i32 = arith.constant 128 : i32
    %9 = vector.broadcast %c128_i32 : i32 to vector<1x128xi32>
    %10 = arith.cmpi slt, %8, %9 : vector<1x128xi32>
    %c0_i32 = arith.constant 0 : i32
    %11 = vector.broadcast %c0_i32 : i32 to vector<1x128xi32>
    %12 = arith.cmpi sgt, %7, %11 : vector<1x128xi32>
    %13 = arith.andi %12, %10 : vector<1x128xi1>
    %14 = arith.subf %1, %3 : vector<4x128xf32>
    %15 = math.absf %14 : vector<4x128xf32>
    %cst = arith.constant 1.000000e+00 : f32
    %16 = vector.broadcast %cst : f32 to vector<4x128xf32>
    %17 = arith.cmpf olt, %15, %16 : vector<4x128xf32>
    %cst_11 = arith.constant 5.000000e-01 : f32
    %18 = vector.broadcast %cst_11 : f32 to vector<4x128xf32>
    %19 = arith.mulf %18, %15 : vector<4x128xf32>
    %20 = arith.mulf %19, %15 : vector<4x128xf32>
    %cst_12 = arith.constant 5.000000e-01 : f32
    %21 = vector.broadcast %cst_12 : f32 to vector<4x128xf32>
    %22 = arith.subf %15, %21 : vector<4x128xf32>
    %23 = arith.select %17, %20, %22 : vector<4x128xi1>, vector<4x128xf32>
    %cst_13 = arith.constant dense<0.000000e+00> : vector<128xf32>
    %24 = vector.multi_reduction <add>, %23, %cst_13 [0] : vector<4x128xf32> to vector<128xf32>
    %25 = vector.shape_cast %24 : vector<128xf32> to vector<1x128xf32>
    %cst_14 = arith.constant 0.000000e+00 : f32
    %26 = vector.broadcast %cst_14 : f32 to vector<1x128xf32>
    %27 = arith.select %13, %25, %26 : vector<1x128xi1>, vector<1x128xf32>
    %28 = vector.shape_cast %27 : vector<1x128xf32> to vector<1x1x128xf32>
    %cst_15 = arith.constant dense<0.000000e+00> : vector<1xf32>
    %29 = vector.multi_reduction <add>, %28, %cst_15 [1, 2] : vector<1x1x128xf32> to vector<1xf32>
    %30 = vector.shape_cast %29 : vector<1xf32> to vector<1x1x1xf32>
    %31 = vector.extract %30[0, 0, 0] : f32 from vector<1x1x1xf32>
    %cst_16 = arith.constant dense<0xFF800000> : vector<128xf32>
    %32 = vector.multi_reduction <maximumf>, %5, %cst_16 [0] : vector<8x128xf32> to vector<128xf32>
    %33 = vector.shape_cast %32 : vector<128xf32> to vector<1x128xf32>
    %34 = vector.broadcast %33 : vector<1x128xf32> to vector<8x128xf32>
    %35 = arith.subf %5, %34 : vector<8x128xf32>
    %36 = math.exp %35 : vector<8x128xf32>
    %cst_17 = arith.constant dense<0.000000e+00> : vector<128xf32>
    %37 = vector.multi_reduction <add>, %36, %cst_17 [0] : vector<8x128xf32> to vector<128xf32>
    %38 = vector.shape_cast %37 : vector<128xf32> to vector<1x128xf32>
    %39 = math.log %38 : vector<1x128xf32>
    %40 = arith.addf %39, %33 : vector<1x128xf32>
    %41 = tpu.iota {dimensions = array<i32: 0>} : vector<8x128xi32>
    %42 = vector.broadcast %7 : vector<1x128xi32> to vector<8x128xi32>
    %43 = arith.cmpi eq, %41, %42 : vector<8x128xi32>
    %cst_18 = arith.constant 0.000000e+00 : f32
    %44 = vector.broadcast %cst_18 : f32 to vector<8x128xf32>
    %45 = arith.select %43, %5, %44 : vector<8x128xi1>, vector<8x128xf32>
    %cst_19 = arith.constant dense<0.000000e+00> : vector<128xf32>
    %46 = vector.multi_reduction <add>, %45, %cst_19 [0] : vector<8x128xf32> to vector<128xf32>
    %47 = vector.shape_cast %46 : vector<128xf32> to vector<1x128xf32>
    %48 = arith.subf %40, %47 : vector<1x128xf32>
    %cst_20 = arith.constant 0.000000e+00 : f32
    %49 = vector.broadcast %cst_20 : f32 to vector<1x128xf32>
    %50 = arith.select %13, %49, %48 : vector<1x128xi1>, vector<1x128xf32>
    %cst_21 = arith.constant -1.000000e+30 : f32
    %51 = vector.broadcast %cst_21 : f32 to vector<1x128xf32>
    %52 = arith.select %10, %50, %51 : vector<1x128xi1>, vector<1x128xf32>
    %53 = vector.shape_cast %52 : vector<1x128xf32> to vector<1x128xf32>
    %54 = vector.broadcast %53 : vector<1x128xf32> to vector<8x128xf32>
    %c0_22 = arith.constant 0 : index
    %c0_23 = arith.constant 0 : index
    %55 = vector.load %arg6[%c0_22, %c0_23] : memref<8x128xf32, #tpu.memory_space<vmem>>, vector<8x128xf32>
    tpu.vector_store %arg6[%c0_22, %c0_23], %54 {strides = array<i32>} : memref<8x128xf32, #tpu.memory_space<vmem>>, vector<8x128xf32>,
    %cst_24 = arith.constant 0.000000e+00 : f32
    %56 = vector.broadcast %cst_24 : f32 to vector<1x128xf32>
    %c0_i32_25 = arith.constant 0 : i32
    %c128_i32_26 = arith.constant 128 : i32
    %57 = arith.muli %c0_i32_25, %c128_i32_26 : i32
    %58 = tpu.assume_multiple %57, 128 : i32
    %c0_27 = arith.constant 0 : index
    %59 = arith.index_cast %58 : i32 to index
    %60 = vector.load %arg6[%c0_27, %59] : memref<8x128xf32, #tpu.memory_space<vmem>>, vector<8x128xf32>
    %61 = tpu.transpose %60, [1, 0] : vector<8x128xf32> -> vector<128x8xf32>
    %62 = vector.extract_strided_slice %61 {offsets = [0, 0], sizes = [128, 1], strides = [1, 1]} : vector<128x8xf32> to vector<128x1xf32>
    %63 = tpu.iota {dimensions = array<i32: 0>} : vector<128x1xi32>
    %64 = vector.broadcast %58 : i32 to vector<128x1xi32>
    %65 = arith.addi %63, %64 : vector<128x1xi32>
    %66 = vector.broadcast %62 : vector<128x1xf32> to vector<128x128xf32>
    %67 = vector.broadcast %52 : vector<1x128xf32> to vector<128x128xf32>
    %68 = arith.cmpf ogt, %66, %67 : vector<128x128xf32>
    %69 = vector.broadcast %62 : vector<128x1xf32> to vector<128x128xf32>
    %70 = vector.broadcast %52 : vector<1x128xf32> to vector<128x128xf32>
    %71 = arith.cmpf oeq, %69, %70 : vector<128x128xf32>
    %72 = vector.broadcast %65 : vector<128x1xi32> to vector<128x128xi32>
    %73 = vector.broadcast %8 : vector<1x128xi32> to vector<128x128xi32>
    %74 = arith.cmpi slt, %72, %73 : vector<128x128xi32>
    %75 = arith.andi %71, %74 : vector<128x128xi1>
    %76 = arith.ori %68, %75 : vector<128x128xi1>
    %77 = arith.extui %76 : vector<128x128xi1> to vector<128x128xi32>
    %78 = arith.sitofp %77 : vector<128x128xi32> to vector<128x128xf32>
    %cst_28 = arith.constant dense<0.000000e+00> : vector<128xf32>
    %79 = vector.multi_reduction <add>, %78, %cst_28 [0] : vector<128x128xf32> to vector<128xf32>
    %80 = vector.shape_cast %79 : vector<128xf32> to vector<1x128xf32>
    %81 = arith.addf %56, %80 : vector<1x128xf32>
    %c1_i32 = arith.constant 1 : i32
    %82 = arith.extui %13 : vector<1x128xi1> to vector<1x128xi32>
    %83 = arith.sitofp %82 : vector<1x128xi32> to vector<1x128xf32>
    %84 = vector.shape_cast %83 : vector<1x128xf32> to vector<1x1x128xf32>
    %cst_29 = arith.constant dense<0.000000e+00> : vector<1xf32>
    %85 = vector.multi_reduction <add>, %84, %cst_29 [1, 2] : vector<1x1x128xf32> to vector<1xf32>
    %86 = vector.shape_cast %85 : vector<1xf32> to vector<1x1x1xf32>
    %87 = vector.extract %86[0, 0, 0] : f32 from vector<1x1x1xf32>
    %cst_30 = arith.constant 3.000000e+00 : f32
    %88 = arith.mulf %cst_30, %87 : f32
    %cst_31 = arith.constant 1.270000e+02 : f32
    %89 = arith.minimumf %88, %cst_31 : f32
    %90 = vector.broadcast %89 : f32 to vector<1x128xf32>
    %91 = arith.cmpf olt, %81, %90 : vector<1x128xf32>
    %92 = arith.andi %91, %10 : vector<1x128xi1>
    %93 = arith.ori %13, %92 : vector<1x128xi1>
    %cst_32 = arith.constant 0.000000e+00 : f32
    %94 = vector.broadcast %cst_32 : f32 to vector<1x128xf32>
    %95 = arith.select %93, %48, %94 : vector<1x128xi1>, vector<1x128xf32>
    %96 = vector.shape_cast %95 : vector<1x128xf32> to vector<1x1x128xf32>
    %cst_33 = arith.constant dense<0.000000e+00> : vector<1xf32>
    %97 = vector.multi_reduction <add>, %96, %cst_33 [1, 2] : vector<1x1x128xf32> to vector<1xf32>
    %98 = vector.shape_cast %97 : vector<1xf32> to vector<1x1x1xf32>
    %99 = vector.extract %98[0, 0, 0] : f32 from vector<1x1x1xf32>
    %100 = tpu.iota {dimensions = array<i32: 0>} : vector<8x128xi32>
    %c0_i32_34 = arith.constant 0 : i32
    %101 = vector.broadcast %c0_i32_34 : i32 to vector<8x128xi32>
    %102 = arith.cmpi eq, %100, %101 : vector<8x128xi32>
    %c1_i32_35 = arith.constant 1 : i32
    %103 = vector.broadcast %c1_i32_35 : i32 to vector<8x128xi32>
    %104 = arith.cmpi eq, %100, %103 : vector<8x128xi32>
    %c2_i32 = arith.constant 2 : i32
    %105 = vector.broadcast %c2_i32 : i32 to vector<8x128xi32>
    %106 = arith.cmpi eq, %100, %105 : vector<8x128xi32>
    %cst_36 = arith.constant 0.000000e+00 : f32
    %107 = vector.broadcast %87 : f32 to vector<8x128xf32>
    %108 = vector.broadcast %cst_36 : f32 to vector<8x128xf32>
    %109 = arith.select %106, %107, %108 : vector<8x128xi1>, vector<8x128xf32>
    %110 = vector.broadcast %99 : f32 to vector<8x128xf32>
    %111 = arith.select %104, %110, %109 : vector<8x128xi1>, vector<8x128xf32>
    %112 = vector.broadcast %31 : f32 to vector<8x128xf32>
    %113 = arith.select %102, %112, %111 : vector<8x128xi1>, vector<8x128xf32>
    %c0_37 = arith.constant 0 : index
    %c0_38 = arith.constant 0 : index
    %c0_39 = arith.constant 0 : index
    %114 = vector.load %arg5[%c0_37, %c0_38, %c0_39] : memref<1x8x128xf32, #tpu.memory_space<vmem>>, vector<1x8x128xf32>
    %115 = vector.shape_cast %114 : vector<1x8x128xf32> to vector<8x128xf32>
    %116 = vector.shape_cast %113 : vector<8x128xf32> to vector<1x8x128xf32>
    tpu.vector_store %arg5[%c0_37, %c0_38, %c0_39], %116 {strides = array<i32>} : memref<1x8x128xf32, #tpu.memory_space<vmem>>, vector<1x8x128xf32>,
    return
  }
  func.func @transform_0(%arg0: i32) -> (i32, i32, i32) {
    %c0_i32 = arith.constant 0 : i32
    %c0_i32_0 = arith.constant 0 : i32
    %c0_i32_1 = arith.constant 0 : i32
    return %arg0, %c0_i32, %c0_i32_0 : i32, i32, i32
  }
  func.func @transform_1(%arg0: i32) -> (i32, i32, i32) {
    %c0_i32 = arith.constant 0 : i32
    %c0_i32_0 = arith.constant 0 : i32
    %c0_i32_1 = arith.constant 0 : i32
    return %arg0, %c0_i32, %c0_i32_0 : i32, i32, i32
  }
  func.func @transform_2(%arg0: i32) -> (i32, i32, i32) {
    %c0_i32 = arith.constant 0 : i32
    %c0_i32_0 = arith.constant 0 : i32
    %c0_i32_1 = arith.constant 0 : i32
    return %arg0, %c0_i32, %c0_i32_0 : i32, i32, i32
  }
  func.func @transform_3(%arg0: i32) -> (i32, i32, i32) {
    %c0_i32 = arith.constant 0 : i32
    %c0_i32_0 = arith.constant 0 : i32
    %c0_i32_1 = arith.constant 0 : i32
    return %arg0, %c0_i32, %c0_i32_0 : i32, i32, i32
  }
  func.func @transform_4(%arg0: i32) -> (i32, i32, i32) {
    %c0_i32 = arith.constant 0 : i32
    %c0_i32_0 = arith.constant 0 : i32
    %c0_i32_1 = arith.constant 0 : i32
    return %arg0, %c0_i32, %c0_i32_0 : i32, i32, i32
  }
}

</mosaic_0001>

<bundles_post_ra>
// kernel: tpu_custom_call.1
= control target key start
LH: loop header
LB: loop body
LE: loop exit
PB: predicated region body
PF: predicated region fallthrough
CT: control target
= control target key end

     0   :  { %s1511_s0 = inlined_call_operand.hbm [shape: f32[2,4,128], index: 0, kind: input, shape index: {}]   ;;  %s1512_s1 = inlined_call_operand.hbm [shape: f32[2,4,128], index: 1, kind: input, shape index: {}]   ;;  %s1513_s2 = inlined_call_operand.hbm [shape: f32[2,8,128], index: 2, kind: input, shape index: {}]   ;;  %s1514_s3 = inlined_call_operand.vmem [shape: s32[2,1,128], index: 3, kind: input, shape index: {}]   ;;  %s1515_s4 = inlined_call_operand.hbm [shape: f32[2,8,128], index: 4, kind: output, shape index: {}]  }
   0x1   :  { %1521 = sst [smem:[#allocation13_spill]] %s1512_s1 }
   0x2   :  { %9 = vsyncpa [#allocation4], 0 }
   0x3   :  { %11 = vsyncpa [#allocation4 + $0x1], 0 }
   0x4   :  { %12 = vsyncpa [#allocation7], 0 }
   0x5   :  { %14 = vsyncpa [#allocation7 + $0x1], 0 }
   0x6   :  { %15 = vsyncpa [#allocation5], 0 }
   0x7   :  { %17 = vsyncpa [#allocation5 + $0x1], 0  ;;  %s1129_s15 = smov 0   ;;  %s1131_s16 = smov 0  }
   0x8   :  { %s1133_s17 = smov 0   ;;  %s1135_s18 = smov 0  }
   0x9 LB: > { %s1150_s19 = sadd.s32 4294967295, %s1095_s18   ;;  %s828_s20 = sadd.s32 4294967294, %s1095_s18   ;;  %s1095_s18 = sphi %s1135_s18, %s1544_s18   ;;  %s1091_s17 = sphi %s1133_s17, %s1543_s17   ;;  %s1087_s16 = sphi %s1131_s16, %s1542_s16   ;;  %s1083_s15 = sphi %s1129_s15, %s1541_s15  }
   0xa   : > { %s1154_s21 = sadd.s32 1, %s1095_s18   ;;  %s30_s22 = sadd.s32 1, %s1091_s17 }
   0xb   : > { %s27_s23 = ssub.s32 %s1095_s18, %s1154_s21  ;;  %p37_p0 = scmp.ne.s32.totalorder %s1091_s17, %s1087_s16 }
   0xc   : > { %p28_p1 = scmp.eq.s32.totalorder %s27_s23, 0  ;;  %p38_p2 = scmp.eq.s32.totalorder %s1095_s18, 0 }
   0xd   : > { %p43_p3 = scmp.ne.s32.totalorder %s1087_s16, %s1083_s15  ;;  %p44_p4 = scmp.eq.s32.totalorder %s1150_s19, 0 }
   0xe   : > { %s1166_s24 = scalar_select %p28_p1, %s1091_s17, %s30_s22  }
   0xf   : > { %p39_p5 = por %p38_p2, %p37_p0  ;;  %p1168_p6 = por %p44_p4, %p43_p3 }
  0x10   : > { %p145_p7 = scmp.eq.s32.totalorder %s1150_s19, 1  ;;  %p151_p8 = scmp.eq.s32.totalorder %s828_s20, 1 }
  0x11   : > { %s1522_s25 = scalar_select %p1168_p6, 1, 0 }
  0x12   : > { %p892_p10 = scmp.lt.s32.totalorder %s1095_s18, 2  ;;  %p1175_p11 = por %p145_p7, %p37_p0 }
  0x13   : > { %p1179_p12 = por %p151_p8, %p43_p3  ;;  %s1184_s28 = sand.u32 1, %s1091_s17  }
  0x14   : > { %s1523_s26 = scalar_select %p1175_p11, 1, 0 }
  0x15   : > { %s1524_s27 = scalar_select %p1179_p12, 1, 0 }
  0x16   : > { %s832_s29 = sshll.u32 %s1095_s18, 6  ;;  %s831_s30 = sshll.u32 %s1184_s28, 2 }
  0x17   : > { %p1188_p13 = pnand %p892_p10, %p39_p5  ;;  %s189_s6 = sand.u32 1, %s1095_s18  }
  0x18   : > { %s1526_s1 = sld [smem:[#allocation13_spill]]  ;;  %s193_s10 = scalar_lea.vmem [#allocation6], %s831_s30 }
  0x19   : > { %s1525_s5 = scalar_select %p1188_p13, 1, 0 }
  0x1a   : > { %s200_s11 = sshll.u32 %s193_s10, 4  ;;  %s1205_s12 = scalar_lea.sflag [#allocation7], %s189_s6  ;;  %s1202_s11 = int_to_ptr.vmem [resolvable:$true] %s200_s11 }
  0x1b   : > { %p1211_p2 = pneg %p1188_p13 }
  0x1e   : > { %s1198_s9 = scalar_lea.hbm %s1526_s1, %s832_s29  ;;  %s940_s23 = scalar_lea.hbm %s1526_s1, 128 }
  0x1f   : > { %s935_s13 = scalar_lea.hbm %s1198_s9, 64  ;;  %p941_p5 = scmp.lt.u32.totalorder %s1198_s9, %s1526_s1 }
  0x20   : > { %p936_p1 = scmp.ne.s32.totalorder %s1198_s9, %s935_s13  ;;  %p942_p7 = scmp.lt.u32.totalorder %s940_s23, %s935_s13 }
  0x21   : > { %p944_p10 = scmp.lt.u32.totalorder %s935_s13, %s1198_s9 }
  0x22   : > { %p938_p3 = pnand %p1211_p2, %p936_p1  ;;  %p943_p8 = por %p942_p7, %p941_p5 }
  0x24   : > { %p939_p4 = pneg %p938_p3  ;;  %p945_p9 = por %p944_p10, %p943_p8 }
  0x26   : > { %p946_p0 = pnand %p945_p9, %p939_p4 }
  0x28   : > { %949 = shalt.err (!%p946_p0)
}
  0x29   : > { %s950_s6 = scalar_lea.vmem %s1202_s11, 64  ;;  %s1097_s10 = smov [#allocation6]  }
  0x2a   : > { %p951_p1 = scmp.ne.s32.totalorder %s1202_s11, %s950_s6  ;;  %s955_s20 = sshll.u32 %s1097_s10, 4  ;;  %s956_s20 = int_to_ptr.vmem [resolvable:$false] %s955_s20 }
  0x2b   : > { %s957_s22 = scalar_lea.vmem %s956_s20, 128  ;;  %p958_p11 = scmp.lt.s32.totalorder %s1202_s11, %s956_s20 }
  0x2c   : > { %p953_p3 = pnand %p951_p1, %p1211_p2  ;;  %p959_p6 = scmp.lt.s32.totalorder %s957_s22, %s950_s6 }
  0x2e   : > { %p954_p12 = pneg %p953_p3  ;;  %p960_p5 = por %p959_p6, %p958_p11 }
  0x30   : > { %p961_p7 = pnand %p960_p5, %p954_p12 }
  0x32   : > { %964 = shalt.err (!%p961_p7)
}
  0x33   : > { %884 = dma.hbm_to_vmem [thread:$0]  (!%p1188_p13), %s1198_s9, 64, %s1202_s11, %s1205_s12  }
  0x34   : > { %p229_p9 = scmp.lt.s32.totalorder %s1095_s18, 3  ;;  %s1241_s7 = scalar_lea.hbm %s1511_s0, %s832_s29 }
  0x35   : > { %p1528_p6 = scmp.ge.s32.totalorder %s1095_s18, 1  ;;  %s175_s6 = scalar_lea.vmem [#allocation3], %s831_s30 }
  0x36   : > { %s182_s10 = sshll.u32 %s175_s6, 4  ;;  %s835_s9 = sshll.u32 %s1184_s28, 3  ;;  %s1251_s10 = int_to_ptr.vmem [resolvable:$true] %s182_s10 }
  0x37   : > { %p1245_p11 = pnand %p1528_p6, %p229_p9  ;;  %s172_s11 = scalar_lea.sflag [#allocation4], %s1184_s28 }
  0x38   : > { %s965_s20 = scalar_lea.hbm %s1241_s7, 64  ;;  %s970_s13 = scalar_lea.hbm %s1511_s0, 128 }
  0x39   : > { %s1529_s8 = scalar_select %p1245_p11, 1, 0 }
  0x3a   : > { %p966_p12 = scmp.ne.s32.totalorder %s1241_s7, %s965_s20  ;;  %p971_p8 = scmp.lt.u32.totalorder %s1241_s7, %s1511_s0 }
  0x3b   : > { %p972_p10 = scmp.lt.u32.totalorder %s970_s13, %s965_s20  ;;  %p974_p3 = scmp.lt.u32.totalorder %s965_s20, %s1241_s7 }
  0x3c   : > { %p968_p0 = pnand %p966_p12, %p1211_p2 }
  0x3d   : > { %p973_p1 = por %p972_p10, %p971_p8 }
  0x3e   : > { %p969_p4 = pneg %p968_p0 }
  0x3f   : > { %p975_p5 = por %p974_p3, %p973_p1 }
  0x41   : > { %p976_p7 = pnand %p975_p5, %p969_p4 }
  0x43   : > { %979 = shalt.err (!%p976_p7)
}
  0x44   : > { %s980_s30 = scalar_lea.vmem %s1251_s10, 64  ;;  %s1098_s6 = smov [#allocation3]  }
  0x45   : > { %p981_p9 = scmp.ne.s32.totalorder %s1251_s10, %s980_s30  ;;  %s985_s29 = sshll.u32 %s1098_s6, 4  ;;  %s986_s29 = int_to_ptr.vmem [resolvable:$false] %s985_s29 }
  0x46   : > { %s987_s1 = scalar_lea.vmem %s986_s29, 128  ;;  %p988_p0 = scmp.lt.s32.totalorder %s1251_s10, %s986_s29 }
  0x47   : > { %p983_p6 = pnand %p981_p9, %p1211_p2  ;;  %p989_p11 = scmp.lt.s32.totalorder %s987_s1, %s980_s30 }
  0x49   : > { %p984_p12 = pneg %p983_p6  ;;  %p990_p8 = por %p989_p11, %p988_p0 }
  0x4b   : > { %p991_p10 = pnand %p990_p8, %p984_p12 }
  0x4d   : > { %994 = shalt.err (!%p991_p10)
}
  0x4e   : > { %881 = dma.hbm_to_vmem [thread:$0]  (!%p1188_p13), %s1241_s7, 64, %s1251_s10, %s172_s11  }
  0x4f   : > { %s836_s20 = sshll.u32 %s1095_s18, 7  ;;  %s211_s30 = scalar_lea.vmem [#allocation8], %s835_s9 }
  0x50   : > { %s1280_s23 = scalar_lea.hbm %s1513_s2, %s836_s20  ;;  %s218_s6 = sshll.u32 %s211_s30, 4  ;;  %s219_s6 = int_to_ptr.vmem [resolvable:$true] %s218_s6 }
  0x51   : > { %s995_s29 = scalar_lea.hbm %s1280_s23, 128  ;;  %s1000_s11 = scalar_lea.hbm %s1513_s2, 256 }
  0x52   : > { %p996_p11 = scmp.ne.s32.totalorder %s1280_s23, %s995_s29  ;;  %p1001_p3 = scmp.lt.u32.totalorder %s1280_s23, %s1513_s2 }
  0x53   : > { %p1002_p5 = scmp.lt.u32.totalorder %s1000_s11, %s995_s29  ;;  %p1004_p9 = scmp.lt.u32.totalorder %s995_s29, %s1280_s23 }
  0x54   : > { %p998_p4 = pnand %p996_p11, %p1211_p2 }
  0x55   : > { %p1003_p7 = por %p1002_p5, %p1001_p3 }
  0x56   : > { %p999_p1 = pneg %p998_p4 }
  0x57   : > { %p1005_p6 = por %p1004_p9, %p1003_p7 }
  0x59   : > { %p1006_p12 = pnand %p1005_p6, %p999_p1 }
  0x5b   : > { %1009 = shalt.err (!%p1006_p12)
}
  0x5c   : > { %s1010_s28 = scalar_lea.vmem %s219_s6, 128  ;;  %s1099_s9 = smov [#allocation8]  }
  0x5d   : > { %p1011_p0 = scmp.ne.s32.totalorder %s219_s6, %s1010_s28  ;;  %s1015_s22 = sshll.u32 %s1099_s9, 4  ;;  %s1016_s22 = int_to_ptr.vmem [resolvable:$false] %s1015_s22 }
  0x5e   : > { %s1017_s13 = scalar_lea.vmem %s1016_s22, 256  ;;  %p1018_p11 = scmp.lt.s32.totalorder %s219_s6, %s1016_s22 }
  0x5f   : > { %p1013_p8 = pnand %p1011_p0, %p1211_p2  ;;  %p1019_p4 = scmp.lt.s32.totalorder %s1017_s13, %s1010_s28 }
  0x61   : > { %p1014_p10 = pneg %p1013_p8  ;;  %p1020_p13 = por %p1019_p4, %p1018_p11 }
  0x63   : > { %p1021_p3 = pnand %p1020_p13, %p1014_p10 }
  0x65   : > { %1024 = shalt.err (!%p1021_p3)
}
  0x66   : > { %p1530_p5 = scmp.ne.s32.totalorder %s1525_s5, 0  ;;  %p1531_p1 = scmp.ne.s32.totalorder %s1529_s8, 0 }
  0x67   : > { %s1305_s14 = sand.u32 (!%p1531_p1), 1, %s1087_s16   ;;  %p1532_p13 = scmp.ne.s32.totalorder (!%p1531_p1), %s1522_s25, 0 }
  0x68   : > { %887 = dma.hbm_to_vmem [thread:$0]  (!%p1530_p5), %s1280_s23, 128, %s219_s6, %s1205_s12  }
  0x69   : > { %233 = sbr.rel (%p1531_p1) target bundleno = 738 (0x2e2), region = 36  ;;  %s838_s30 = sshll.u32 (!%p1531_p1), %s1305_s14, 2 }
  0x6a   : > { %s236_s29 = scalar_lea.sflag (!%p1531_p1), [#allocation4], %s1305_s14  ;;  %s1309_s7 = scalar_lea.vmem (!%p1531_p1), [#allocation3], %s838_s30 }
  0x70   : > { %1070 = dma.done.wait (%p1532_p13), %s236_s29, 64  }
  0x71   : > { %1072 = vsyncadd (%p1532_p13), %s236_s29, 4294967232  ;;  %s244_s5 = sand.u32 1, %s1150_s19   ;;  %s1316_s8 = scalar_lea.vmem [#allocation6], %s838_s30 }
  0x72   : > { %s245_s12 = scalar_lea.sflag [#allocation7], %s244_s5 }
  0x73   : > { %1074 = dma.done.wait (%p1532_p13), %s245_s12, 192  }
  0x74   : > { %1076 = vsyncadd (%p1532_p13), %s245_s12, 4294967104  ;;  %p295_p2 = scmp.lt.s32.totalorder %s1150_s19, 1  ;;  %s840_s23 = sshll.u32 %s1305_s14, 3  ;;  %vm1519_vm0 = vcmask 1040384   ;;  %v1100_v3 = vmov 0.0   ;;  %v302_v9 = vlaneseq  ;;  %v1101_v27 = vmov 0  }
  0x75   : > { %s257_s20 = scalar_lea.vmem [#allocation8], %s840_s23  ;;  %929 = vset.pattern.permute.xlu1 %v1101_v27  ;;  %v298_v38 = vld [vmem:[%s1309_s7] sm:$0xf]  ;;  %v299_v39 = vld [vmem:[%s1316_s8] sm:$0xf]  ;;  %vm314_vm4 = vcmask 1043456  }
  0x76   : > { %s296_s6 = scalar_select %p295_p2, %s1150_s19, 1  ;;  %v300_v0 = vld [vmem:[%s257_s20] sm:$0xff]  ;;  %v1338_v13 = vshrl.u32 %v302_v9, 7  ;;  %v307_v40 = vsub.f32 %v298_v38, %v299_v39  ;;  %v1533_v39 = vmov 0 }
  0x77   : > { %v334_v2 = vrot.slane %v300_v0, 4  ;;  %s1102_s22 = smov 127.0   ;;  %s861_s30 = sshll.u32 %s1150_s19, 7 }
  0x78   : > { %s297_s1 = scalar_lea.vmem %s1514_s3, %s296_s6  ;;  %v356_v15 = vsub.s32 0, %v1338_v13  ;;  %v308_v41 = vand.u32 2147483647, %v307_v40  ;;  %v411_v40 = vadd.s32 40, %v1338_v13  ;;  %s294_s29 = scalar_lea.vmem [#allocation9], %s840_s23 }
  0x79   : > { %v1330_v1 = vld [vmem:[%s297_s1] sm:$0x1]  ;;  %v335_v5 = vmax.f32 %v300_v0, %v334_v2  ;;  %s706_s7 = sshll.u32 %s294_s29, 4  ;;  %s1467_s6 = scalar_lea.hbm %s1515_s4, %s861_s30  ;;  %s1469_s7 = int_to_ptr.vmem [resolvable:$true] %s706_s7 }
  0x7a   : > { %vm1520_vm1 = vcmp.gt.s32.totalorder %v1330_v1, 0  ;;  %v357_v16 = vrot.slane %v1330_v1, %v356_v15  ;;  %v310_v42 = vmul.f32 0.5, %v308_v41  ;;  %v842_v44 = vadd.f32 -0.5, %v308_v41  ;;  %s693_s19 = scalar_lea.sflag [#allocation5], %s1305_s14  ;;  %s1025_s23 = scalar_lea.vmem %s1469_s7, 128 }
  0x7b   : > { %v859_v4 = vsel %vm1520_vm1, 1.0, %v1100_v3  ;;  %v336_v7 = vrot.slane %v335_v5, 2  ;;  %vm309_vm3 = vcmp.lt.f32.partialorder %v308_v41, 1.0  ;;  %p1026_p7 = scmp.ne.s32.totalorder %s1469_s7, %s1025_s23  ;;  %p1538_p9 = scmp.ne.s32.totalorder %s1523_s26, 0 }
  0x7c   : > { %v655_v6 = vsel %vm1519_vm0, %v859_v4, 0.0  ;;  %vm358_vm2 = vcmp.eq.s32.totalorder %v1338_v13, %v357_v16  ;;  %v311_v43 = vmul.f32 %v310_v42, %v308_v41  ;;  %v412_v41 = vadd.s32 48, %v1338_v13  ;;  %s1103_s10 = smov [#allocation9]  }
  0x7d   : > { %656 = vadd.xlane.f32.xlu1 %v655_v6  ;;  %v337_v8 = vmax.f32 %v335_v5, %v336_v7  ;;  %v359_v19 = vsel %vm358_vm2, %v300_v0, 0.0  ;;  %p1027_p6 = pnand %p1026_p7, %p1538_p9  ;;  %s1029_s11 = sshll.u32 %s1103_s10, 4  ;;  %s1030_s11 = int_to_ptr.vmem [resolvable:$false] %s1029_s11 }
  0x7e   : > { %v360_v21 = vrot.slane %v359_v19, 4  ;;  %v313_v45 = vsel %vm309_vm3, %v311_v43, %v842_v44  ;;  %v413_v43 = vadd.s32 56, %v1338_v13  ;;  %s1031_s1 = scalar_lea.vmem %s1030_s11, 256  ;;  %p1032_p0 = scmp.lt.s32.totalorder %s1469_s7, %s1030_s11 }
  0x7f   : > { %v338_v10 = vrot.slane %v337_v8, 1  ;;  %v315_v46 = vsel %vm314_vm4, %v313_v45, 0.0  ;;  %v414_v45 = vadd.s32 64, %v1338_v13  ;;  %p1028_p12 = pneg %p1027_p6  ;;  %p1033_p8 = scmp.lt.s32.totalorder %s1031_s1, %s1025_s23 }
  0x80   : > { %v361_v24 = vadd.f32 %v360_v21, %v359_v19  ;;  %v316_v47 = vrot.slane %v315_v46, 4 }
  0x81   : > { %v339_v11 = vmax.f32 %v337_v8, %v338_v10  ;;  %p1034_p10 = por %p1033_p8, %p1032_p0 }
  0x82   : > { %v362_v28 = vrot.slane %v361_v24, 2  ;;  %v317_v48 = vadd.f32 %v316_v47, %v315_v46 }
  0x83   : > { %v340_v12 = vsub.f32 %v300_v0, %v339_v11  ;;  %p1035_p11 = pnand %p1034_p10, %p1028_p12 }
  0x84   : > { %v363_v29 = vadd.f32 %v362_v28, %v361_v24  ;;  %v318_v49 = vrot.slane %v317_v48, 2 }
  0x85   : > { %v341_v14 = vmul.f32 1.442695, %v340_v12 }
  0x86   : > { %v364_v30 = vrot.slane %v363_v29, 1  ;;  %v319_v50 = vadd.f32 %v318_v49, %v317_v48 }
  0x87   : > { %931 = vpow2.f32 %v341_v14 }
  0x88   : > { %v365_v33 = vadd.f32 %v364_v30, %v363_v29  ;;  %v320_v51 = vrot.slane %v319_v50, 1  ;;  %v1357_v30 = vand.u32 127, %v302_v9  ;;  %v410_v9 = vadd.s32 32, %v1338_v13 }
  0x8a   : > { %v321_v52 = vadd.f32 %v320_v51, %v319_v50  ;;  %vm551_vm5 = vcmp.lt.s32.totalorder %v1338_v13, %v1357_v30  ;;  %v415_v50 = vadd.s32 72, %v1338_v13 }
  0x8c   : > { %v322_v53 = vsel %vm1520_vm1, %v321_v52, 0.0 }
  0x8d   : > { %v324_v54 = vsel %vm1519_vm0, %v322_v53, 0.0  ;;  %vm555_vm0 = vcmp.lt.s32.totalorder %v410_v9, %v1357_v30  ;;  %v416_v53 = vadd.s32 80, %v1338_v13 }
  0x91   : > { %v932_v17 = vpop.eup %931 }
  0x92   : > { %v343_v18 = vrot.slane %v932_v17, 4 }
  0x94   : > { %v344_v20 = vadd.f32 %v932_v17, %v343_v18 }
  0x96   : > { %v345_v22 = vrot.slane %v344_v20, 2 }
  0x98   : > { %v346_v23 = vadd.f32 %v345_v22, %v344_v20 }
  0x9a   : > { %v347_v25 = vrot.slane %v346_v23, 1 }
  0x9c   : > { %v348_v26 = vadd.f32 %v347_v25, %v346_v23 }
  0x9e   : > { %933 = vlog2.f32 %v348_v26 }
  0xa8   : > { %v934_v31 = vpop.eup %933 }
  0xa9   : > { %v350_v32 = vmul.f32 0.6931472, %v934_v31 }
  0xab   : > { %v351_v34 = vadd.f32 %v350_v32, %v339_v11  ;;  %v407_v32 = vadd.s32 8, %v1338_v13 }
  0xad   : > { %v1343_v35 = vsub.f32 %v351_v34, %v365_v33  ;;  %v408_v33 = vadd.s32 16, %v1338_v13  ;;  %vm552_vm7 = vcmp.lt.s32.totalorder %v407_v32, %v1357_v30 }
  0xaf   : > { %v367_v36 = vsel %vm1520_vm1, 0.0, %v1343_v35  ;;  %vm553_vm11 = vcmp.lt.s32.totalorder %v408_v33, %v1357_v30 }
  0xb0   : > { %v1348_v37 = vrot.slane %v367_v36, %v356_v15  ;;  %v409_v36 = vadd.s32 24, %v1338_v13 }
  0xb2   : > { %375 = vxpose.xlu0.b32.start.end [1/1] (short) %v1348_v37, 128  ;;  %vm554_vm2 = vcmp.lt.s32.totalorder %v409_v36, %v1357_v30 }
  0xdb   : > { %930 = vset.pattern.permute.xlu0 %v1101_v27 }
 0x10a   : > { %v657_v10 = vpop.xlane.xlu1 %656 }
 0x10b   : > { %v658_v11 = vrot.slane %v657_v10, 4 }
 0x10d   : > { %v659_v12 = vadd.f32 %v658_v11, %v657_v10  ;;  %v420_v11 = vadd.s32 112, %v1338_v13 }
 0x10f   : > { %v660_v14 = vrot.slane %v659_v12, 2 }
 0x111   : > { %v661_v17 = vadd.f32 %v660_v14, %v659_v12 }
 0x113   : > { %v662_v20 = vrot.slane %v661_v17, 1 }
 0x115   : > { %v663_v24 = vadd.f32 %v662_v20, %v661_v17 }
 0x11b   : > { %325 = vadd.xlane.f32.xlu0 %v324_v54 }
 0x132   : > { %v391_v55 = vpop.trf.xlu0 }
 0x133   : > { %441 = vperm.xlu1 %929, %v391_v55  }
 0x136   : > { %v392_v56 = vpop.trf.xlu0 }
 0x137   : > { %446 = vperm.xlu1 %929, %v392_v56  }
 0x13a   : > { %v393_v57 = vpop.trf.xlu0 }
 0x13b   : > { %451 = vperm.xlu1 %929, %v393_v57   ;;  %v417_v57 = vadd.s32 88, %v1338_v13 }
 0x13e   : > { %v394_v58 = vpop.trf.xlu0 }
 0x13f   : > { %456 = vperm.xlu1 %929, %v394_v58  }
 0x142   : > { %v395_v59 = vpop.trf.xlu0 }
 0x143   : > { %461 = vperm.xlu1 %929, %v395_v59  }
 0x146   : > { %v396_v60 = vpop.trf.xlu0 }
 0x147   : > { %466 = vperm.xlu1 %929, %v396_v60   ;;  %v418_v60 = vadd.s32 96, %v1338_v13 }
 0x14a   : > { %v397_v61 = vpop.trf.xlu0 }
 0x14b   : > { %471 = vperm.xlu1 %929, %v397_v61  }
 0x14e   : > { %v398_v62 = vpop.trf.xlu0 }
 0x14f   : > { %476 = vperm.xlu1 %929, %v398_v62  }
 0x152   : > { %v399_v63 = vpop.trf.xlu0 }
 0x153   : > { %481 = vperm.xlu1 %929, %v399_v63  }
 0x156   : > { %v400_v0 = vpop.trf.xlu0 }
 0x157   : > { %486 = vperm.xlu1 %929, %v400_v0  }
 0x15a   : > { %v401_v2 = vpop.trf.xlu0 }
 0x15b   : > { %491 = vperm.xlu1 %929, %v401_v2  }
 0x15e   : > { %v402_v4 = vpop.trf.xlu0 }
 0x15f   : > { %496 = vperm.xlu1 %929, %v402_v4   ;;  %v419_v4 = vadd.s32 104, %v1338_v13 }
 0x162   : > { %v403_v5 = vpop.trf.xlu0 }
 0x163   : > { %501 = vperm.xlu1 %929, %v403_v5  }
 0x166   : > { %v404_v6 = vpop.trf.xlu0 }
 0x167   : > { %506 = vperm.xlu1 %929, %v404_v6  }
 0x16a   : > { %v405_v7 = vpop.trf.xlu0 }
 0x16b   : > { %511 = vperm.xlu1 %929, %v405_v7  }
 0x16e   : > { %v406_v8 = vpop.trf.xlu0 }
 0x16f   : > { %516 = vperm.xlu1 %929, %v406_v8  }
 0x1a8   : > { %v326_v15 = vpop.xlane.xlu0 %325 }
 0x1a9   : > { %v327_v16 = vrot.slane %v326_v15, 4 }
 0x1ab   : > { %v328_v18 = vadd.f32 %v327_v16, %v326_v15 }
 0x1ad   : > { %v329_v19 = vrot.slane %v328_v18, 2 }
 0x1af   : > { %v330_v21 = vadd.f32 %v329_v19, %v328_v18  ;;  %v421_v18 = vadd.s32 120, %v1338_v13 }
 0x1b1   : > { %v331_v22 = vrot.slane %v330_v21, 1 }
 0x1b2   : > { %v442_v23 = vpop.permute.xlu1 %441 }
 0x1b3   : > { %v332_v25 = vadd.f32 %v331_v22, %v330_v21  ;;  %vm535_vm6 = vcmp.eq.f32.partialorder %v442_v23, %v1348_v37  ;;  %vm519_vm9 = vcmp.gt.f32.partialorder %v442_v23, %v1348_v37 }
 0x1b4   : > { %vm567_vm10 = vmand %vm535_vm6, %vm551_vm5 }
 0x1b5   : > { %864 = vpush %v332_v25  ;;  %vm1372_vm15 = vmor %vm519_vm9, %vm567_vm10  ;;  %vm556_vm10 = vcmp.lt.s32.totalorder %v411_v40, %v1357_v30 }
 0x1b6   : > { %866 = vpush %v663_v24  ;;  %v447_v26 = vpop.permute.xlu1 %446  ;;  %v1534_v39 = vsel %vm1372_vm15, 4294967295, %v1533_v39 }
 0x1b7   : > { %vm536_vm8 = vcmp.eq.f32.partialorder %v447_v26, %v1348_v37  ;;  %vm520_vm13 = vcmp.gt.f32.partialorder %v447_v26, %v1348_v37 }
 0x1b8   : > { %vm568_vm14 = vmand %vm536_vm8, %vm552_vm7 }
 0x1b9   : > { %vm584_vm6 = vmor %vm520_vm13, %vm568_vm14  ;;  %vm557_vm14 = vcmp.lt.s32.totalorder %v412_v41, %v1357_v30 }
 0x1ba   : > { %v452_v27 = vpop.permute.xlu1 %451  ;;  %v844_v44 = vsel %vm584_vm6, 1.0, %v1100_v3 }
 0x1bb   : > { %vm537_vm12 = vcmp.eq.f32.partialorder %v452_v27, %v1348_v37  ;;  %vm521_vm4 = vcmp.gt.f32.partialorder %v452_v27, %v1348_v37 }
 0x1bc   : > { %vm569_vm5 = vmand %vm537_vm12, %vm553_vm11 }
 0x1bd   : > { %vm585_vm9 = vmor %vm521_vm4, %vm569_vm5 }
 0x1be   : > { %v457_v28 = vpop.permute.xlu1 %456  ;;  %v845_v47 = vsel %vm585_vm9, 1.0, %v1100_v3 }
 0x1bf   : > { %vm538_vm3 = vcmp.eq.f32.partialorder %v457_v28, %v1348_v37  ;;  %vm522_vm7 = vcmp.gt.f32.partialorder %v457_v28, %v1348_v37 }
 0x1c0   : > { %vm570_vm8 = vmand %vm538_vm3, %vm554_vm2  ;;  %vm1535_vm3 = vnez %v1534_v39 }
 0x1c1   : > { %vm586_vm13 = vmor %vm522_vm7, %vm570_vm8  ;;  %v843_v46 = vsel %vm1535_vm3, 1.0, %v1100_v3  ;;  %vm560_vm3 = vcmp.lt.s32.totalorder %v415_v50, %v1357_v30 }
 0x1c2   : > { %v462_v29 = vpop.permute.xlu1 %461  ;;  %v631_v49 = vadd.f32 %v844_v44, %v843_v46  ;;  %v846_v51 = vsel %vm586_vm13, 1.0, %v1100_v3 }
 0x1c3   : > { %vm539_vm1 = vcmp.eq.f32.partialorder %v462_v29, %v1348_v37  ;;  %vm523_vm11 = vcmp.gt.f32.partialorder %v462_v29, %v1348_v37 }
 0x1c4   : > { %vm571_vm12 = vmand %vm539_vm1, %vm555_vm0  ;;  %vm558_vm0 = vcmp.lt.s32.totalorder %v413_v43, %v1357_v30  ;;  %v632_v52 = vadd.f32 %v845_v47, %v631_v49 }
 0x1c5   : > { %vm587_vm6 = vmor %vm523_vm11, %vm571_vm12 }
 0x1c6   : > { %v467_v31 = vpop.permute.xlu1 %466  ;;  %v847_v54 = vsel %vm587_vm6, 1.0, %v1100_v3  ;;  %v633_v56 = vadd.f32 %v846_v51, %v632_v52  ;;  %vm561_vm6 = vcmp.lt.s32.totalorder %v416_v53, %v1357_v30 }
 0x1c7   : > { %vm540_vm15 = vcmp.eq.f32.partialorder %v467_v31, %v1348_v37  ;;  %vm524_vm4 = vcmp.gt.f32.partialorder %v467_v31, %v1348_v37 }
 0x1c8   : > { %vm572_vm5 = vmand %vm540_vm15, %vm556_vm10  ;;  %vm559_vm15 = vcmp.lt.s32.totalorder %v414_v45, %v1357_v30  ;;  %v634_v59 = vadd.f32 %v847_v54, %v633_v56 }
 0x1c9   : > { %vm588_vm9 = vmor %vm524_vm4, %vm572_vm5 }
 0x1ca   : > { %v472_v34 = vpop.permute.xlu1 %471  ;;  %v848_v58 = vsel %vm588_vm9, 1.0, %v1100_v3  ;;  %vm562_vm9 = vcmp.lt.s32.totalorder %v417_v57, %v1357_v30 }
 0x1cb   : > { %vm541_vm2 = vcmp.eq.f32.partialorder %v472_v34, %v1348_v37  ;;  %vm525_vm7 = vcmp.gt.f32.partialorder %v472_v34, %v1348_v37  ;;  %v635_v63 = vadd.f32 %v848_v58, %v634_v59 }
 0x1cc   : > { %vm573_vm8 = vmand %vm541_vm2, %vm557_vm14 }
 0x1cd   : > { %vm589_vm13 = vmor %vm525_vm7, %vm573_vm8 }
 0x1ce   : > { %v477_v38 = vpop.permute.xlu1 %476  ;;  %v849_v61 = vsel %vm589_vm13, 1.0, %v1100_v3  ;;  %vm563_vm13 = vcmp.lt.s32.totalorder %v418_v60, %v1357_v30 }
 0x1cf   : > { %vm542_vm1 = vcmp.eq.f32.partialorder %v477_v38, %v1348_v37  ;;  %vm526_vm11 = vcmp.gt.f32.partialorder %v477_v38, %v1348_v37  ;;  %v636_v2 = vadd.f32 %v849_v61, %v635_v63 }
 0x1d0   : > { %vm574_vm12 = vmand %vm542_vm1, %vm558_vm0 }
 0x1d1   : > { %vm590_vm5 = vmor %vm526_vm11, %vm574_vm12 }
 0x1d2   : > { %v482_v42 = vpop.permute.xlu1 %481  ;;  %v850_v0 = vsel %vm590_vm5, 1.0, %v1100_v3 }
 0x1d3   : > { %vm543_vm10 = vcmp.eq.f32.partialorder %v482_v42, %v1348_v37  ;;  %vm527_vm2 = vcmp.gt.f32.partialorder %v482_v42, %v1348_v37  ;;  %v637_v7 = vadd.f32 %v850_v0, %v636_v2 }
 0x1d4   : > { %vm575_vm4 = vmand %vm543_vm10, %vm559_vm15 }
 0x1d5   : > { %vm591_vm8 = vmor %vm527_vm2, %vm575_vm4 }
 0x1d6   : > { %v487_v48 = vpop.permute.xlu1 %486  ;;  %v851_v5 = vsel %vm591_vm8, 1.0, %v1100_v3 }
 0x1d7   : > { %vm544_vm14 = vcmp.eq.f32.partialorder %v487_v48, %v1348_v37  ;;  %vm528_vm1 = vcmp.gt.f32.partialorder %v487_v48, %v1348_v37  ;;  %v638_v10 = vadd.f32 %v851_v5, %v637_v7 }
 0x1d8   : > { %vm576_vm7 = vmand %vm544_vm14, %vm560_vm3 }
 0x1d9   : > { %vm592_vm12 = vmor %vm528_vm1, %vm576_vm7  ;;  %vm564_vm1 = vcmp.lt.s32.totalorder %v419_v4, %v1357_v30 }
 0x1da   : > { %v492_v55 = vpop.permute.xlu1 %491  ;;  %v852_v8 = vsel %vm592_vm12, 1.0, %v1100_v3 }
 0x1db   : > { %vm545_vm0 = vcmp.eq.f32.partialorder %v492_v55, %v1348_v37  ;;  %vm529_vm10 = vcmp.gt.f32.partialorder %v492_v55, %v1348_v37  ;;  %v639_v15 = vadd.f32 %v852_v8, %v638_v10 }
 0x1dc   : > { %vm577_vm11 = vmand %vm545_vm0, %vm561_vm6 }
 0x1dd   : > { %vm593_vm2 = vmor %vm529_vm10, %vm577_vm11  ;;  %vm565_vm11 = vcmp.lt.s32.totalorder %v420_v11, %v1357_v30 }
 0x1de   : > { %v497_v62 = vpop.permute.xlu1 %496  ;;  %v853_v12 = vsel %vm593_vm2, 1.0, %v1100_v3  ;;  %vm566_vm2 = vcmp.lt.s32.totalorder %v421_v18, %v1357_v30 }
 0x1df   : > { %vm546_vm15 = vcmp.eq.f32.partialorder %v497_v62, %v1348_v37  ;;  %vm530_vm3 = vcmp.gt.f32.partialorder %v497_v62, %v1348_v37  ;;  %v640_v17 = vadd.f32 %v853_v12, %v639_v15 }
 0x1e0   : > { %vm578_vm14 = vmand %vm546_vm15, %vm562_vm9 }
 0x1e1   : > { %vm594_vm0 = vmor %vm530_vm3, %vm578_vm14 }
 0x1e2   : > { %v502_v6 = vpop.permute.xlu1 %501  ;;  %v854_v16 = vsel %vm594_vm0, 1.0, %v1100_v3 }
 0x1e3   : > { %vm547_vm4 = vcmp.eq.f32.partialorder %v502_v6, %v1348_v37  ;;  %vm531_vm5 = vcmp.gt.f32.partialorder %v502_v6, %v1348_v37  ;;  %v641_v21 = vadd.f32 %v854_v16, %v640_v17 }
 0x1e4   : > { %vm579_vm6 = vmand %vm547_vm4, %vm563_vm13 }
 0x1e5   : > { %vm595_vm7 = vmor %vm531_vm5, %vm579_vm6 }
 0x1e6   : > { %v507_v14 = vpop.permute.xlu1 %506  ;;  %v855_v19 = vsel %vm595_vm7, 1.0, %v1100_v3  ;;  %s1447_s25 = spop %864  ;;  %vm1536_vm7 = vcmp.gt.s32.totalorder %v1330_v1, 0 }
 0x1e7   : > { %vm532_vm8 = vcmp.gt.f32.partialorder %v507_v14, %v1348_v37  ;;  %vm548_vm9 = vcmp.eq.f32.partialorder %v507_v14, %v1348_v37  ;;  %v642_v23 = vadd.f32 %v855_v19, %v641_v21  ;;  %s1449_s28 = spop %866  ;;  %v689_v46 = vstv %s1447_s25 }
 0x1e8   : > { %vm580_vm15 = vmand %vm548_vm9, %vm564_vm1  ;;  %s665_s9 = smul.f32 3.0, %s1449_s28  ;;  %vm1537_vm9 = vcmask 1040384   ;;  %v685_v1 = vstv %s1449_s28 }
 0x1e9   : > { %vm596_vm10 = vmor %vm532_vm8, %vm580_vm15  ;;  %vm684_vm15 = vcmp.eq.s32.totalorder %v1338_v13, 2 }
 0x1ea   : > { %v512_v20 = vpop.permute.xlu1 %511  ;;  %v856_v22 = vsel %vm596_vm10, 1.0, %v1100_v3  ;;  %s666_s13 = smin.f32 %s1102_s22, %s665_s9  ;;  %vm683_vm10 = vcmp.eq.s32.totalorder %v1338_v13, 1 }
 0x1eb   : > { %vm533_vm12 = vcmp.gt.f32.partialorder %v512_v20, %v1348_v37  ;;  %vm549_vm13 = vcmp.eq.f32.partialorder %v512_v20, %v1348_v37  ;;  %v643_v26 = vadd.f32 %v856_v22, %v642_v23  ;;  %v667_v36 = vstv %s666_s13 }
 0x1ec   : > { %vm581_vm3 = vmand %vm549_vm13, %vm565_vm11  ;;  %vm682_vm11 = vcmp.eq.s32.totalorder %v1338_v13, 0 }
 0x1ed   : > { %vm597_vm14 = vmor %vm533_vm12, %vm581_vm3 }
 0x1ee   : > { %v857_v24 = vsel %vm597_vm14, 1.0, %v1100_v3  ;;  %v517_v25 = vpop.permute.xlu1 %516 }
 0x1ef   : > { %vm534_vm4 = vcmp.gt.f32.partialorder %v517_v25, %v1348_v37  ;;  %vm550_vm5 = vcmp.eq.f32.partialorder %v517_v25, %v1348_v37  ;;  %v644_v27 = vadd.f32 %v857_v24, %v643_v26 }
 0x1f0   : > { %vm582_vm6 = vmand %vm550_vm5, %vm566_vm2 }
 0x1f1   : > { %vm598_vm0 = vmor %vm534_vm4, %vm582_vm6 }
 0x1f2   : > { %v858_v28 = vsel %vm598_vm0, 1.0, %v1100_v3 }
 0x1f3   : > { %v645_v29 = vadd.f32 %v858_v28, %v644_v27 }
 0x1f5   : > { %v646_v31 = vrot.slane %v645_v29, 4 }
 0x1f7   : > { %v647_v30 = vadd.f32 %v646_v31, %v645_v29 }
 0x1f9   : > { %v648_v32 = vrot.slane %v647_v30, 2 }
 0x1fb   : > { %v649_v33 = vadd.f32 %v648_v32, %v647_v30 }
 0x1fd   : > { %v650_v34 = vrot.slane %v649_v33, 1 }
 0x1ff   : > { %v651_v37 = vadd.f32 %v650_v34, %v649_v33 }
 0x201   : > { %vm668_vm1 = vcmp.lt.f32.partialorder %v651_v37, %v667_v36 }
 0x202   : > { %vm670_vm8 = vmor %vm1536_vm7, %vm668_vm1 }
 0x203   : > { %v671_v3 = vsel %vm670_vm8, %v1343_v35, 0.0  ;;  %v686_v35 = vsel %vm684_vm15, %v685_v1, 0.0 }
 0x204   : > { %v672_v9 = vsel %vm1537_vm9, %v671_v3, 0.0 }
 0x205   : > { %673 = vadd.xlane.f32.xlu1 %v672_v9 }
 0x292   : > { %v674_v38 = vpop.xlane.xlu1 %673 }
 0x293   : > { %v675_v39 = vrot.slane %v674_v38, 4 }
 0x295   : > { %v676_v40 = vadd.f32 %v675_v39, %v674_v38 }
 0x297   : > { %v677_v41 = vrot.slane %v676_v40, 2 }
 0x299   : > { %v678_v42 = vadd.f32 %v677_v41, %v676_v40 }
 0x29b   : > { %v679_v43 = vrot.slane %v678_v42, 1 }
 0x29d   : > { %v680_v44 = vadd.f32 %v679_v43, %v678_v42 }
 0x29f   : > { %868 = vpush %v680_v44 }
 0x2d0   : > { %s869_s5 = spop %868 }
 0x2d1   : > { %v687_v45 = vstv %s869_s5 }
 0x2d2   : > { %v688_v47 = vsel %vm683_vm10, %v687_v45, %v686_v35 }
 0x2d3   : > { %v690_v48 = vsel %vm682_vm11, %v689_v46, %v688_v47 }
 0x2d4   : > { %691 = vst [vmem:[%s294_s29] sm:$0xff] %v690_v48 }
 0x2d5   : > { %1038 = shalt.err (!%p1035_p11)
}
 0x2d6   : > { %s1039_s14 = scalar_lea.hbm %s1467_s6, 128  ;;  %s1043_s28 = scalar_lea.hbm %s1515_s4, 256 }
 0x2d7   : > { %p1040_p4 = scmp.ne.s32.totalorder %s1467_s6, %s1039_s14  ;;  %p1044_p1 = scmp.lt.u32.totalorder %s1467_s6, %s1515_s4 }
 0x2d8   : > { %p1045_p13 = scmp.lt.u32.totalorder %s1043_s28, %s1039_s14  ;;  %p1047_p7 = scmp.lt.u32.totalorder %s1039_s14, %s1467_s6 }
 0x2d9   : > { %p1041_p3 = pnand %p1040_p4, %p1538_p9 }
 0x2da   : > { %p1046_p2 = por %p1045_p13, %p1044_p1 }
 0x2db   : > { %p1042_p5 = pneg %p1041_p3 }
 0x2dc   : > { %p1048_p6 = por %p1047_p7, %p1046_p2 }
 0x2de   : > { %p1049_p12 = pnand %p1048_p6, %p1042_p5 }
 0x2e0   : > { %1052 = shalt.err (!%p1049_p12)
}
 0x2e1   : > { %876 = dma.vmem_to_hbm [thread:$0]  (%p1538_p9), %s1469_s7, 128, %s1467_s6, %s693_s19  }
 0x2e2 PF: > { %s718_s13 = sand.u32 1, %s1083_s15   ;;  %p1539_p0 = scmp.ne.s32.totalorder %s1524_s27, 0 }
 0x2e3   : > { %p1540_p8 = scmp.ge.s32.totalorder %s1095_s18, 2  ;;  %s719_s30 = scalar_lea.sflag [#allocation5], %s718_s13 }
 0x2e5   : > { %p889_p10 = pnand %p1540_p8, %p1539_p0 }
 0x2e7   : > { %1078 = dma.done.wait (!%p889_p10), %s719_s30, 128  }
 0x2e8   : > { %1080 = vsyncadd (!%p889_p10), %s719_s30, 4294967168  ;;  %p20_p11 = scmp.ge.s32.totalorder %s1154_s21, 4   ;;  %s1541_s15 = smov %s1087_s16 }
 0x2e9   : > { %s1542_s16 = smov %s1091_s17  ;;  %s1543_s17 = smov %s1166_s24 }
 0x2ea   : > { %s1544_s18 = smov %s1154_s21  ;;  %22 = sbr.rel (!%p20_p11) target bundleno = 9 (0x9), region = 108 }
 0x2f1   :  { %724 = vsyncpa [#allocation4], 1 }
 0x2f2   :  { %726 = vsyncpa [#allocation4 + $0x1], 1 }
 0x2f3   :  { %727 = vsyncpa [#allocation7], 1 }
 0x2f4   :  { %729 = vsyncpa [#allocation7 + $0x1], 1 }
 0x2f5   :  { %730 = vsyncpa [#allocation5], 1 }
 0x2f6   :  { %732 = vsyncpa [#allocation5 + $0x1], 1 }

</bundles_post_ra>
